<compile_context>
chip_gen: v5e
topology: v5e:2x2
jax: 0.10.0
libtpu: 0.0.40
codegen_flags: <defaults>
</compile_context>

<pallas_src>
import functools

import jax
import jax.numpy as jnp
from jax.experimental import pallas as pl
from jax.experimental.pallas import tpu as pltpu

UTT_DIM = 32
IMG_DIM = 64
CTX_DIM = 31
CONCAT_DIM = UTT_DIM + IMG_DIM + CTX_DIM + 1   # 128
HIDDEN_DIM = 256
N_LABELS = 4
OUT_PAD = 128          # lane-dense padded output width
NEG_SLOPE = 0.01       # PyTorch LeakyReLU default
BN_EPS = 1e-5          # PyTorch BatchNorm1d default


def _round_up(x, m):
    return (x + m - 1) // m * m


def _leaky(x):
    return jnp.where(x > 0, x, NEG_SLOPE * x)


def _mlp_kernel(msg_ref, img_ref, ctx_ref, cr_ref,
                w1_ref, b1_ref, w2_ref, b2_ref, o_ref):
    """One batch tile: concat -> LeakyReLU -> Linear1(BN folded) -> LeakyReLU -> Linear2."""
    # In-kernel concat of the raw f32 features into one lane-dense (TB, 128)
    # slab (32 | 64 | 31 | 1 lanes). No HBM-side concat/cast round trip.
    x = jnp.concatenate(
        [msg_ref[...], img_ref[...], ctx_ref[...], cr_ref[...]], axis=1)
    x = _leaky(x)                                   # full-lane VPU op
    # Dropout is identity in eval mode.

    # Single K=128 MXU dot against the full BN-folded W1, f32 accumulate.
    h = jnp.dot(x, w1_ref[...], preferred_element_type=jnp.float32)
    h = _leaky(h + b1_ref[...])                     # (TB, 256)

    # Linear2, zero-padded to 128 output lanes -> unmasked lane-dense store.
    out = jnp.dot(h, w2_ref[...], preferred_element_type=jnp.float32)
    out = out + b2_ref[...]
    # TODO(synk): if output writeback ever dominates (v5e), pack 32 rows x 4
    # labels into one 128-lane row in-kernel instead of the padded 128-wide store.
    o_ref[...] = out.astype(o_ref.dtype)


def fold_and_pack_params(raw):
    """Fold eval-mode BatchNorm into Linear1 and zero-pad Linear2 to a
    lane-dense 128-wide output. Weights stay f32 (tiny; avoids bf16 rounding
    of BN-scaled rows when running_var is small).

    raw: dict with
      w1: (128, 256)  b1: (256,)
      gamma, beta, running_mean, running_var: (256,)
      w2: (256, 4)    b2: (4,)
    """
    scale = raw["gamma"] * jax.lax.rsqrt(raw["running_var"] + BN_EPS)        # (256,)
    w1f = raw["w1"].astype(jnp.float32) * scale[None, :]                     # (128, 256)
    b1f = (raw["b1"] - raw["running_mean"]) * scale + raw["beta"]            # (256,)

    w2p = jnp.zeros((HIDDEN_DIM, OUT_PAD), jnp.float32).at[:, :N_LABELS].set(
        raw["w2"].astype(jnp.float32))
    b2p = jnp.zeros((OUT_PAD,), jnp.float32).at[:N_LABELS].set(
        raw["b2"].astype(jnp.float32))

    return {
        "w1": w1f,                                            # (128, 256) f32
        "b1": b1f.reshape(1, HIDDEN_DIM).astype(jnp.float32),
        "w2": w2p,                                            # (256, 128) f32
        "b2": b2p.reshape(1, OUT_PAD),
    }


def _pick_tile(batch, block_b):
    """Batch tile: >=2 grid steps (v7x megacore), >=512 rows when batch allows
    (amortize ~0.35us/step), <= block_b (<=1024 keeps v5e scoped VMEM happy)."""
    block_b = max(8, block_b - block_b % 8)
    bp8 = _round_up(batch, 8)
    if bp8 <= 16:
        return bp8
    half = _round_up(pl.cdiv(bp8, 2), 8)
    return max(min(block_b, half), min(512, half))


def basic_network_forward(packed, context, last_msg, image, cr_flag, *, block_b=1024):
    """BasicNetwork.forward (eval mode). Returns (B, n_labels) float32 logits."""
    B = last_msg.shape[0]

    # No wrapper-side concat/cast: raw f32 features go straight to the kernel.
    msg = last_msg.astype(jnp.float32)
    img = image.astype(jnp.float32)
    ctx = context.astype(jnp.float32)
    cr = cr_flag.astype(jnp.float32).reshape(B, 1)   # metadata-only reshape

    tb = _pick_tile(B, block_b)
    bp = _round_up(B, tb)
    pad = bp - B
    if pad:  # only when B is not a multiple of the tile
        msg = jnp.pad(msg, ((0, pad), (0, 0)))
        img = jnp.pad(img, ((0, pad), (0, 0)))
        ctx = jnp.pad(ctx, ((0, pad), (0, 0)))
        cr = jnp.pad(cr, ((0, pad), (0, 0)))
    grid = (bp // tb,)

    def batch_spec(width):
        return pl.BlockSpec((tb, width), lambda i: (i, 0))

    def const_spec(shape):
        # Constant block index -> DMA'd once, VMEM-resident across the grid.
        # (Default double-buffering of these ~256 KiB of weights is negligible,
        #  so pipeline_mode tweaks are intentionally skipped.)
        return pl.BlockSpec(shape, lambda i: (0, 0))

    out = pl.pallas_call(
        _mlp_kernel,
        out_shape=jax.ShapeDtypeStruct((bp, OUT_PAD), jnp.bfloat16),
        grid=grid,
        in_specs=[
            batch_spec(UTT_DIM),                     # last_msg (TB, 32) f32
            batch_spec(IMG_DIM),                     # image    (TB, 64) f32
            batch_spec(CTX_DIM),                     # context  (TB, 31) f32
            batch_spec(1),                           # cr_flag  (TB, 1)  f32
            const_spec((CONCAT_DIM, HIDDEN_DIM)),    # W1 (BN folded), f32
            const_spec((1, HIDDEN_DIM)),             # b1 (BN folded)
            const_spec((HIDDEN_DIM, OUT_PAD)),       # W2 (zero-padded)
            const_spec((1, OUT_PAD)),                # b2 (zero-padded)
        ],
        out_specs=batch_spec(OUT_PAD),
        compiler_params=pltpu.CompilerParams(
            dimension_semantics=("parallel",),
        ),
    )(msg, img, ctx, cr,
      packed["w1"], packed["b1"], packed["w2"], packed["b2"])

    return out[:B, :N_LABELS].astype(jnp.float32)


def reference_forward(raw, context, last_msg, image, cr_flag):
    """Pure-JAX f32 reference mirroring the PyTorch eval-mode forward."""
    x = jnp.concatenate(
        [last_msg, image, context, cr_flag[:, None]], axis=1).astype(jnp.float32)
    x = _leaky(x)                                   # dropout is identity in eval
    h = x @ raw["w1"] + raw["b1"]
    h = (h - raw["running_mean"]) * jax.lax.rsqrt(raw["running_var"] + BN_EPS)
    h = h * raw["gamma"] + raw["beta"]
    h = _leaky(h)
    return h @ raw["w2"] + raw["b2"]


if __name__ == "__main__":
    key = jax.random.PRNGKey(0)
    kc, km, ki, kf, k1, kb1, kg, kb, kmu, kv, k2, kb2 = jax.random.split(key, 12)

    B = 64  # small demo batch; feature dims are fixed by the module config
    context = jax.random.normal(kc, (B, CTX_DIM), jnp.float32)
    last_msg = jax.random.normal(km, (B, UTT_DIM), jnp.float32)
    image = jax.random.normal(ki, (B, IMG_DIM), jnp.float32)
    cr_flag = (jax.random.uniform(kf, (B,)) < 0.5).astype(jnp.float32)

    raw = {
        "w1": jax.random.normal(k1, (CONCAT_DIM, HIDDEN_DIM), jnp.float32)
              / jnp.sqrt(float(CONCAT_DIM)),
        "b1": 0.1 * jax.random.normal(kb1, (HIDDEN_DIM,), jnp.float32),
        "gamma": 1.0 + 0.1 * jax.random.normal(kg, (HIDDEN_DIM,), jnp.float32),
        "beta": 0.1 * jax.random.normal(kb, (HIDDEN_DIM,), jnp.float32),
        "running_mean": 0.1 * jax.random.normal(kmu, (HIDDEN_DIM,), jnp.float32),
        "running_var": 0.5 + jax.random.uniform(kv, (HIDDEN_DIM,), jnp.float32),
        "w2": jax.random.normal(k2, (HIDDEN_DIM, N_LABELS), jnp.float32)
              / jnp.sqrt(float(HIDDEN_DIM)),
        "b2": 0.1 * jax.random.normal(kb2, (N_LABELS,), jnp.float32),
    }

    packed = fold_and_pack_params(raw)

    fwd = jax.jit(functools.partial(basic_network_forward, block_b=1024))
    out = fwd(packed, context, last_msg, image, cr_flag)
    out = jax.block_until_ready(out)

    ref = reference_forward(raw, context, last_msg, image, cr_flag)
    assert out.shape == (B, N_LABELS), out.shape
    max_err = float(jnp.max(jnp.abs(out - ref)))
    assert max_err < 5e-2, f"max abs error vs reference: {max_err}"
    print("KERNEL_OK")
</pallas_src>

<mosaic_0001>
module attributes {stable_mosaic.version = 11 : i64} {
  func.func @_mlp_kernel(%arg0: i32, %arg1: memref<32x32xf32, #tpu.memory_space<vmem>>, %arg2: memref<32x64xf32, #tpu.memory_space<vmem>>, %arg3: memref<32x31xf32, #tpu.memory_space<vmem>>, %arg4: memref<32x1xf32, #tpu.memory_space<vmem>>, %arg5: memref<128x256xf32, #tpu.memory_space<vmem>>, %arg6: memref<1x256xf32, #tpu.memory_space<vmem>>, %arg7: memref<256x128xf32, #tpu.memory_space<vmem>>, %arg8: memref<1x128xf32, #tpu.memory_space<vmem>>, %arg9: memref<32x128xbf16, #tpu.memory_space<vmem>>) attributes {dimension_semantics = [#tpu.dimension_semantics<parallel>], iteration_bounds = array<i64: 2>, scalar_prefetch = 0 : i64, scratch_operands = 0 : i64, tpu.core_type = #tpu.core_type<tc>, window_params = [{transform_indices = @transform_0, window_bounds = array<i64: 32, 32>}, {transform_indices = @transform_1, window_bounds = array<i64: 32, 64>}, {transform_indices = @transform_2, window_bounds = array<i64: 32, 31>}, {transform_indices = @transform_3, window_bounds = array<i64: 32, 1>}, {pipeline_mode = #tpu.pipeline_mode<synchronous>, transform_indices = @transform_4, window_bounds = array<i64: 128, 256>}, {pipeline_mode = #tpu.pipeline_mode<synchronous>, transform_indices = @transform_5, window_bounds = array<i64: 1, 256>}, {pipeline_mode = #tpu.pipeline_mode<synchronous>, transform_indices = @transform_6, window_bounds = array<i64: 256, 128>}, {pipeline_mode = #tpu.pipeline_mode<synchronous>, transform_indices = @transform_7, window_bounds = array<i64: 1, 128>}, {transform_indices = @transform_8, window_bounds = array<i64: 32, 128>}]} {
    %c0 = arith.constant 0 : index
    %c0_0 = arith.constant 0 : index
    %0 = vector.load %arg1[%c0, %c0_0] : memref<32x32xf32, #tpu.memory_space<vmem>>, vector<32x32xf32>
    %c0_1 = arith.constant 0 : index
    %c0_2 = arith.constant 0 : index
    %1 = vector.load %arg2[%c0_1, %c0_2] : memref<32x64xf32, #tpu.memory_space<vmem>>, vector<32x64xf32>
    %c0_3 = arith.constant 0 : index
    %c0_4 = arith.constant 0 : index
    %2 = vector.load %arg3[%c0_3, %c0_4] : memref<32x31xf32, #tpu.memory_space<vmem>>, vector<32x31xf32>
    %c0_5 = arith.constant 0 : index
    %c0_6 = arith.constant 0 : index
    %3 = vector.load %arg4[%c0_5, %c0_6] : memref<32x1xf32, #tpu.memory_space<vmem>>, vector<32x1xf32>
    %4 = tpu.concatenate %0, %1, %2, %3 in 1 : vector<32x32xf32>, vector<32x64xf32>, vector<32x31xf32>, vector<32x1xf32> -> vector<32x128xf32>
    %cst = arith.constant 0.000000e+00 : f32
    %5 = vector.broadcast %cst : f32 to vector<32x128xf32>
    %6 = arith.cmpf ogt, %4, %5 : vector<32x128xf32>
    %cst_7 = arith.constant 0.00999999977 : f32
    %7 = vector.broadcast %cst_7 : f32 to vector<32x128xf32>
    %8 = arith.mulf %7, %4 : vector<32x128xf32>
    %9 = arith.select %6, %4, %8 : vector<32x128xi1>, vector<32x128xf32>
    %c0_8 = arith.constant 0 : index
    %c0_9 = arith.constant 0 : index
    %10 = vector.load %arg5[%c0_8, %c0_9] : memref<128x256xf32, #tpu.memory_space<vmem>>, vector<128x256xf32>
    %cst_10 = arith.constant dense<0.000000e+00> : vector<32x256xf32>
    %11 = tpu.matmul %9, %10, %cst_10 {dimension_numbers = #tpu.dot_dimension_numbers<[1], [0], [0], [1], [0, 0, 1, 1], [], []>} : vector<32x128xf32>, vector<128x256xf32>, vector<32x256xf32> -> vector<32x256xf32>
    %c0_11 = arith.constant 0 : index
    %c0_12 = arith.constant 0 : index
    %12 = vector.load %arg6[%c0_11, %c0_12] : memref<1x256xf32, #tpu.memory_space<vmem>>, vector<1x256xf32>
    %13 = vector.broadcast %12 : vector<1x256xf32> to vector<32x256xf32>
    %14 = arith.addf %11, %13 : vector<32x256xf32>
    %cst_13 = arith.constant 0.000000e+00 : f32
    %15 = vector.broadcast %cst_13 : f32 to vector<32x256xf32>
    %16 = arith.cmpf ogt, %14, %15 : vector<32x256xf32>
    %cst_14 = arith.constant 0.00999999977 : f32
    %17 = vector.broadcast %cst_14 : f32 to vector<32x256xf32>
    %18 = arith.mulf %17, %14 : vector<32x256xf32>
    %19 = arith.select %16, %14, %18 : vector<32x256xi1>, vector<32x256xf32>
    %c0_15 = arith.constant 0 : index
    %c0_16 = arith.constant 0 : index
    %20 = vector.load %arg7[%c0_15, %c0_16] : memref<256x128xf32, #tpu.memory_space<vmem>>, vector<256x128xf32>
    %cst_17 = arith.constant dense<0.000000e+00> : vector<32x128xf32>
    %21 = tpu.matmul %19, %20, %cst_17 {dimension_numbers = #tpu.dot_dimension_numbers<[1], [0], [0], [1], [0, 0, 1, 1], [], []>} : vector<32x256xf32>, vector<256x128xf32>, vector<32x128xf32> -> vector<32x128xf32>
    %c0_18 = arith.constant 0 : index
    %c0_19 = arith.constant 0 : index
    %22 = vector.load %arg8[%c0_18, %c0_19] : memref<1x128xf32, #tpu.memory_space<vmem>>, vector<1x128xf32>
    %23 = vector.broadcast %22 : vector<1x128xf32> to vector<32x128xf32>
    %24 = arith.addf %21, %23 : vector<32x128xf32>
    %25 = arith.truncf %24 : vector<32x128xf32> to vector<32x128xbf16>
    %c0_20 = arith.constant 0 : index
    %c0_21 = arith.constant 0 : index
    %26 = vector.load %arg9[%c0_20, %c0_21] : memref<32x128xbf16, #tpu.memory_space<vmem>>, vector<32x128xbf16>
    tpu.vector_store %arg9[%c0_20, %c0_21], %25 {strides = array<i32>} : memref<32x128xbf16, #tpu.memory_space<vmem>>, vector<32x128xbf16>,
    return
  }
  func.func @transform_0(%arg0: i32) -> (i32, i32) {
    %c0_i32 = arith.constant 0 : i32
    %c0_i32_0 = arith.constant 0 : i32
    return %arg0, %c0_i32 : i32, i32
  }
  func.func @transform_1(%arg0: i32) -> (i32, i32) {
    %c0_i32 = arith.constant 0 : i32
    %c0_i32_0 = arith.constant 0 : i32
    return %arg0, %c0_i32 : i32, i32
  }
  func.func @transform_2(%arg0: i32) -> (i32, i32) {
    %c0_i32 = arith.constant 0 : i32
    %c0_i32_0 = arith.constant 0 : i32
    return %arg0, %c0_i32 : i32, i32
  }
  func.func @transform_3(%arg0: i32) -> (i32, i32) {
    %c0_i32 = arith.constant 0 : i32
    %c0_i32_0 = arith.constant 0 : i32
    return %arg0, %c0_i32 : i32, i32
  }
  func.func @transform_4(%arg0: i32) -> (i32, i32) {
    %c0_i32 = arith.constant 0 : i32
    %c0_i32_0 = arith.constant 0 : i32
    %c0_i32_1 = arith.constant 0 : i32
    return %c0_i32, %c0_i32_0 : i32, i32
  }
  func.func @transform_5(%arg0: i32) -> (i32, i32) {
    %c0_i32 = arith.constant 0 : i32
    %c0_i32_0 = arith.constant 0 : i32
    %c0_i32_1 = arith.constant 0 : i32
    return %c0_i32, %c0_i32_0 : i32, i32
  }
  func.func @transform_6(%arg0: i32) -> (i32, i32) {
    %c0_i32 = arith.constant 0 : i32
    %c0_i32_0 = arith.constant 0 : i32
    %c0_i32_1 = arith.constant 0 : i32
    return %c0_i32, %c0_i32_0 : i32, i32
  }
  func.func @transform_7(%arg0: i32) -> (i32, i32) {
    %c0_i32 = arith.constant 0 : i32
    %c0_i32_0 = arith.constant 0 : i32
    %c0_i32_1 = arith.constant 0 : i32
    return %c0_i32, %c0_i32_0 : i32, i32
  }
  func.func @transform_8(%arg0: i32) -> (i32, i32) {
    %c0_i32 = arith.constant 0 : i32
    %c0_i32_0 = arith.constant 0 : i32
    return %arg0, %c0_i32 : i32, i32
  }
}

</mosaic_0001>

<bundles_post_ra>
// kernel: basic_network_forward.1
= control target key start
LH: loop header
LB: loop body
LE: loop exit
PB: predicated region body
PF: predicated region fallthrough
CT: control target
= control target key end

     0   :  { %13 = vsyncpa [#allocation3], 0  ;;  %s1153_s0 = inlined_call_operand.vmem [shape: f32[64,32], index: 0, kind: input, shape index: {}]   ;;  %s1154_s1 = inlined_call_operand.vmem [shape: f32[64,64], index: 1, kind: input, shape index: {}]   ;;  %s1155_s2 = inlined_call_operand.vmem [shape: f32[64,31], index: 2, kind: input, shape index: {}]   ;;  %s1156_s3 = inlined_call_operand.vmem [shape: f32[64,1], index: 3, kind: input, shape index: {}]   ;;  %s1157_s4 = inlined_call_operand.hbm [shape: f32[128,256], index: 4, kind: input, shape index: {}]   ;;  %s1158_s5 = inlined_call_operand.vmem [shape: f32[1,256], index: 5, kind: input, shape index: {}]   ;;  %s1159_s6 = inlined_call_operand.hbm [shape: f32[256,128], index: 6, kind: input, shape index: {}]   ;;  %s1160_s7 = inlined_call_operand.vmem [shape: f32[1,128], index: 7, kind: input, shape index: {}]   ;;  %s1161_s8 = inlined_call_operand.vmem [shape: bf16[64,128], index: 8, kind: output, shape index: {}]  }
   0x1   :  { %14 = vsyncpa [#allocation5], 0  ;;  %s1035_s27 = smov 0  }
   0x2 LB: > { %s250_s30 = sshll.u32 %s1157_s4, 4  ;;  %s836_s9 = sadd.s32 4294967295, %s979_s27   ;;  %s979_s27 = sphi %s1035_s27, %s20_s27   ;;  %s251_s30 = int_to_ptr.hbm [resolvable:$true] %s250_s30 }
   0x3   : > { %p838_p0 = scmp.ge.s32.totalorder %s979_s27, 1  ;;  %p239_p1 = scmp.lt.s32.totalorder %s979_s27, 3 }
   0x4   : > { %p1046_p2 = scmp.eq.s32.totalorder %s836_s9, 0  ;;  %s981_s12 = smov [#allocation2]  }
   0x5   : > { %p1050_p3 = pnand %p838_p0, %p239_p1  ;;  %s252_s13 = sshll.u32 %s981_s12, 4  ;;  %s253_s13 = int_to_ptr.vmem [resolvable:$true] %s252_s13 }
   0x6   : > { %s267_s16 = sshll.u32 %s1159_s6, 4  ;;  %s982_s17 = smov [#allocation4]   ;;  %s268_s16 = int_to_ptr.hbm [resolvable:$true] %s267_s16 }
   0x7   : > { %p876_p4 = pneg %p1050_p3  ;;  %s269_s18 = sshll.u32 %s982_s17, 4  ;;  %s270_s18 = int_to_ptr.vmem [resolvable:$true] %s269_s18 }
   0x8   : > { %s983_s19 = smov 256   ;;  %s984_s20 = smov 16  }
   0x9   : > { %p877_p5 = pnand %p1046_p2, %p876_p4  ;;  %s985_s21 = smov 128  }
   0xa   : > { %s986_s22 = smov 8   ;;  %324 = sbr.rel (%p1050_p3) target bundleno = 448 (0x1c0), region = 52 }
   0xb   : > { %879 = dma.hbm_to_vmem [thread:$0]  (!%p877_p5), %s251_s30, 4096, %s253_s13, [#allocation3], %s983_s19, %s983_s19, %s984_s20  }
   0xc   : > { %882 = dma.hbm_to_vmem [thread:$0]  (!%p877_p5), %s268_s16, 4096, %s270_s18, [#allocation5], %s985_s21, %s985_s21, %s986_s22  }
   0xf   : > { %970 = dma.done.wait (%p1046_p2), [#allocation3], 4096  }
  0x10   : > { %972 = vsyncadd (%p1046_p2), [#allocation3], 4294963200 }
  0x11   : > { %974 = dma.done.wait (%p1046_p2), [#allocation5], 4096  }
  0x12   : > { %976 = vsyncadd (%p1046_p2), [#allocation5], 4294963200  ;;  %s845_s23 = sshll.u32 %s836_s9, 2  ;;  %s987_s9 = smov 127   ;;  %v530_v2 = vld [vmem:[#allocation2 + $0xf0] sm:$0xff]  ;;  %v531_v4 = vld [vmem:[#allocation2 + $0xf8] sm:$0xff] }
  0x13   : > { %p380_p6 = scmp.lt.s32.totalorder %s845_s23, 7  ;;  %s988_s11 = smov 32   ;;  %538 = vmatpush.msra.mxu0 %v530_v2  ;;  %v528_v5 = vld [vmem:[#allocation2 + $0xe0] sm:$0xff]  ;;  %567 = vmatpush.msra.mxu1 %v531_v4  ;;  %v529_v6 = vld [vmem:[#allocation2 + $0xe8] sm:$0xff]  ;;  %v526_v7 = vld [vmem:[#allocation2 + $0xd0] sm:$0xff]  ;;  %vm473_vm0 = vcmask 261120  }
  0x14   : > { %s989_s15 = smov 96   ;;  %v527_v10 = vld [vmem:[#allocation2 + $0xd8] sm:$0xff]  ;;  %v524_v11 = vld [vmem:[#allocation2 + $0xc0] sm:$0xff]  ;;  %v525_v13 = vld [vmem:[#allocation2 + $0xc8] sm:$0xff]  ;;  %vm478_vm1 = vcmask 785408   ;;  %vm483_vm2 = vcmask 1039360  }
  0x15   : > { %s1165_s23 = smov (!%p380_p6, %s845_s23), 7  ;;  %539 = vmatpush.msra.mxu0 %v528_v5  ;;  %568 = vmatpush.msra.mxu1 %v529_v6  ;;  %v522_v14 = vld [vmem:[#allocation2 + $0xb0] sm:$0xff]  ;;  %v523_v15 = vld [vmem:[#allocation2 + $0xb8] sm:$0xff]  ;;  %v520_v16 = vld [vmem:[#allocation2 + $0xa0] sm:$0xff] }
  0x16   : > { %s1074_s24 = sshll.u32 %s1165_s23, 3  ;;  %v521_v17 = vld [vmem:[#allocation2 + $0xa8] sm:$0xff]  ;;  %v518_v18 = vld [vmem:[#allocation2 + $0x90] sm:$0xff]  ;;  %v519_v21 = vld [vmem:[#allocation2 + $0x98] sm:$0xff] }
  0x17   : > { %s1080_s28 = scalar_lea.vmem %s1156_s3, %s1074_s24  ;;  %s1086_s10 = scalar_lea.vmem %s1154_s1, %s1074_s24  ;;  %540 = vmatpush.msra.mxu0 %v526_v7  ;;  %569 = vmatpush.msra.mxu1 %v527_v10  ;;  %v516_v22 = vld [vmem:[#allocation2 + $0x80] sm:$0xff]  ;;  %v517_v24 = vld [vmem:[#allocation2 + $0x88] sm:$0xff]  ;;  %v514_v25 = vld [vmem:[#allocation2 + $0x70] sm:$0xff] }
  0x18   : > { %v421_v0 = vld [vmem:[%s1080_s28] sm:$0xff]  ;;  %s1096_s14 = scalar_lea.vmem %s1155_s2, %s1074_s24  ;;  %v414_v8 = vld [vmem:[%s1086_s10 + $0x8] sm:$0xff]  ;;  %v415_v19 = vld [vmem:[%s1086_s10 + $0x10] sm:$0xff]  ;;  %s1122_s18 = scalar_lea.vmem %s1153_s0, %s1074_s24 }
  0x19   : > { %v413_v1 = vld [vmem:[%s1086_s10] sm:$0xff]  ;;  %461 = vrot.lane.b32.xlu1 %v421_v0, %s987_s9  ;;  %v418_v3 = vld [vmem:[%s1096_s14 + $0x8] sm:$0xff]  ;;  %541 = vmatpush.msra.mxu0 %v524_v11  ;;  %v419_v20 = vld [vmem:[%s1096_s14 + $0x10] sm:$0xff]  ;;  %s854_s24 = sshll.u32 %s1165_s23, 2 }
  0x1a   : > { %429 = vrot.lane.b32.xlu0 %v413_v1, %s988_s11  ;;  %447 = vrot.lane.b32.xlu2 %v418_v3, %s989_s15  ;;  %v417_v9 = vld [vmem:[%s1096_s14] sm:$0xff]  ;;  %v422_v12 = vld [vmem:[%s1080_s28 + $0x8] sm:$0xff]  ;;  %v515_v26 = vld [vmem:[#allocation2 + $0x78] sm:$0xff] }
  0x1b   : > { %570 = vmatpush.msra.mxu1 %v525_v13  ;;  %542 = vmatpush.msra.mxu0 %v522_v14  ;;  %v423_v23 = vld [vmem:[%s1080_s28 + $0x10] sm:$0xff]  ;;  %v416_v27 = vld [vmem:[%s1086_s10 + $0x18] sm:$0xff]  ;;  %v512_v30 = vld [vmem:[#allocation2 + $0x60] sm:$0xff] }
  0x1c   : > { %v420_v28 = vld [vmem:[%s1096_s14 + $0x18] sm:$0xff]  ;;  %v513_v31 = vld [vmem:[#allocation2 + $0x68] sm:$0xff]  ;;  %v510_v32 = vld [vmem:[#allocation2 + $0x50] sm:$0xff] }
  0x1d   : > { %571 = vmatpush.msra.mxu1 %v523_v15  ;;  %543 = vmatpush.msra.mxu0 %v520_v16  ;;  %v424_v29 = vld [vmem:[%s1080_s28 + $0x18] sm:$0xff]  ;;  %v508_v34 = vld [vmem:[#allocation2 + $0x40] sm:$0xff]  ;;  %v509_v35 = vld [vmem:[#allocation2 + $0x48] sm:$0xff]  ;;  %s407_s28 = scalar_lea.vmem %s1161_s8, %s854_s24 }
  0x1e   : > { %v511_v33 = vld [vmem:[#allocation2 + $0x58] sm:$0xff]  ;;  %v506_v36 = vld [vmem:[#allocation2 + $0x30] sm:$0xff]  ;;  %v504_v38 = vld [vmem:[#allocation2 + $0x20] sm:$0xff] }
  0x1f   : > { %572 = vmatpush.msra.mxu1 %v521_v17  ;;  %544 = vmatpush.msra.mxu0 %v518_v18  ;;  %v507_v37 = vld [vmem:[#allocation2 + $0x38] sm:$0xff]  ;;  %v505_v39 = vld [vmem:[#allocation2 + $0x28] sm:$0xff]  ;;  %v502_v40 = vld [vmem:[#allocation2 + $0x10] sm:$0xff] }
  0x20   : > { %v503_v41 = vld [vmem:[#allocation2 + $0x18] sm:$0xff]  ;;  %v500_v42 = vld [vmem:[#allocation2] sm:$0xff]  ;;  %v501_v43 = vld [vmem:[#allocation2 + $0x8] sm:$0xff] }
  0x21   : > { %431 = vrot.lane.b32.xlu1 %v414_v8, %s988_s11  ;;  %573 = vmatpush.msra.mxu1 %v519_v21  ;;  %v409_v47 = vld [vmem:[%s1122_s18] sm:$0xff]  ;;  %v410_v48 = vld [vmem:[%s1122_s18 + $0x8] sm:$0xff]  ;;  %v635_v49 = vld [vmem:[#allocation4 + $0x78] sm:$0xff] }
  0x22   : > { %445 = vrot.lane.b32.xlu0 %v417_v9, %s989_s15  ;;  %463 = vrot.lane.b32.xlu2 %v422_v12, %s987_s9  ;;  %v651_v50 = vld [vmem:[#allocation4 + $0xf8] sm:$0xff]  ;;  %v634_v51 = vld [vmem:[#allocation4 + $0x70] sm:$0xff]  ;;  %v633_v56 = vld [vmem:[#allocation4 + $0x68] sm:$0xff] }
  0x23   : > { %545 = vmatpush.msra.mxu0 %v516_v22  ;;  %574 = vmatpush.msra.mxu1 %v517_v24  ;;  %v650_v52 = vld [vmem:[#allocation4 + $0xf0] sm:$0xff]  ;;  %v649_v57 = vld [vmem:[#allocation4 + $0xe8] sm:$0xff]  ;;  %v632_v62 = vld [vmem:[#allocation4 + $0x60] sm:$0xff] }
  0x24   : > { %656 = vmatpush.msra.mxu2 %v635_v49  ;;  %685 = vmatpush.msra.mxu3 %v651_v50  ;;  %v648_v63 = vld [vmem:[#allocation4 + $0xe0] sm:$0xff]  ;;  %v631_v2 = vld [vmem:[#allocation4 + $0x58] sm:$0xff]  ;;  %v411_v6 = vld [vmem:[%s1122_s18 + $0x10] sm:$0xff] }
  0x25   : > { %546 = vmatpush.msra.mxu0 %v514_v25  ;;  %575 = vmatpush.msra.mxu1 %v515_v26  ;;  %v647_v3 = vld [vmem:[#allocation4 + $0xd8] sm:$0xff]  ;;  %v630_v7 = vld [vmem:[#allocation4 + $0x50] sm:$0xff]  ;;  %v629_v11 = vld [vmem:[#allocation4 + $0x48] sm:$0xff] }
  0x26   : > { %657 = vmatpush.msra.mxu2 %v634_v51  ;;  %686 = vmatpush.msra.mxu3 %v650_v52  ;;  %v646_v8 = vld [vmem:[#allocation4 + $0xd0] sm:$0xff]  ;;  %v645_v12 = vld [vmem:[#allocation4 + $0xc8] sm:$0xff]  ;;  %v628_v16 = vld [vmem:[#allocation4 + $0x40] sm:$0xff] }
  0x27   : > { %547 = vmatpush.msra.mxu0 %v512_v30  ;;  %576 = vmatpush.msra.mxu1 %v513_v31  ;;  %v644_v17 = vld [vmem:[#allocation4 + $0xc0] sm:$0xff]  ;;  %v626_v24 = vld [vmem:[#allocation4 + $0x30] sm:$0xff] }
  0x28   : > { %658 = vmatpush.msra.mxu2 %v633_v56  ;;  %687 = vmatpush.msra.mxu3 %v649_v57  ;;  %v642_v25 = vld [vmem:[#allocation4 + $0xb0] sm:$0xff] }
  0x29   : > { %449 = vrot.lane.b32.xlu1 %v419_v20, %s989_s15  ;;  %548 = vmatpush.msra.mxu0 %v510_v32  ;;  %v643_v20 = vld [vmem:[#allocation4 + $0xb8] sm:$0xff]  ;;  %v624_v32 = vld [vmem:[#allocation4 + $0x20] sm:$0xff] }
  0x2a   : > { %433 = vrot.lane.b32.xlu0 %v415_v19, %s988_s11  ;;  %465 = vrot.lane.b32.xlu2 %v423_v23, %s987_s9  ;;  %v627_v19 = vld [vmem:[#allocation4 + $0x38] sm:$0xff] }
  0x2b   : > { %577 = vmatpush.msra.mxu1 %v511_v33  ;;  %549 = vmatpush.msra.mxu0 %v508_v34  ;;  %v412_v23 = vld [vmem:[%s1122_s18 + $0x18] sm:$0xff]  ;;  %v640_v33 = vld [vmem:[#allocation4 + $0xa0] sm:$0xff] }
  0x2c   : > { %659 = vmatpush.msra.mxu2 %v632_v62  ;;  %688 = vmatpush.msra.mxu3 %v648_v63 }
  0x2d   : > { %578 = vmatpush.msra.mxu1 %v509_v35  ;;  %550 = vmatpush.msra.mxu0 %v506_v36  ;;  %v623_v36 = vld [vmem:[#allocation4 + $0x18] sm:$0xff] }
  0x2e   : > { %660 = vmatpush.msra.mxu2 %v631_v2  ;;  %689 = vmatpush.msra.mxu3 %v647_v3 }
  0x2f   : > { %579 = vmatpush.msra.mxu1 %v507_v37  ;;  %551 = vmatpush.msra.mxu0 %v504_v38  ;;  %v639_v37 = vld [vmem:[#allocation4 + $0x98] sm:$0xff] }
  0x30   : > { %661 = vmatpush.msra.mxu2 %v630_v7  ;;  %690 = vmatpush.msra.mxu3 %v646_v8 }
  0x31   : > { %451 = vrot.lane.b32.xlu1 %v420_v28, %s989_s15  ;;  %580 = vmatpush.msra.mxu1 %v505_v39  ;;  %v625_v28 = vld [vmem:[#allocation4 + $0x28] sm:$0xff] }
  0x32   : > { %435 = vrot.lane.b32.xlu0 %v416_v27, %s988_s11  ;;  %467 = vrot.lane.b32.xlu2 %v424_v29, %s987_s9  ;;  %v641_v29 = vld [vmem:[#allocation4 + $0xa8] sm:$0xff] }
  0x33   : > { %552 = vmatpush.msra.mxu0 %v502_v40  ;;  %581 = vmatpush.msra.mxu1 %v503_v41 }
  0x34   : > { %662 = vmatpush.msra.mxu2 %v629_v11  ;;  %691 = vmatpush.msra.mxu3 %v645_v12 }
  0x35   : > { %553 = vmatpush.msra.mxu0 %v500_v42  ;;  %582 = vmatpush.msra.mxu1 %v501_v43  ;;  %v622_v42 = vld [vmem:[#allocation4 + $0x10] sm:$0xff] }
  0x36   : > { %663 = vmatpush.msra.mxu2 %v628_v16  ;;  %692 = vmatpush.msra.mxu3 %v644_v17  ;;  %v638_v43 = vld [vmem:[#allocation4 + $0x90] sm:$0xff] }
  0x38   : > { %664 = vmatpush.msra.mxu2 %v627_v19  ;;  %693 = vmatpush.msra.mxu3 %v643_v20 }
  0x3a   : > { %665 = vmatpush.msra.mxu2 %v626_v24  ;;  %694 = vmatpush.msra.mxu3 %v642_v25 }
  0x3c   : > { %666 = vmatpush.msra.mxu2 %v625_v28  ;;  %695 = vmatpush.msra.mxu3 %v641_v29 }
  0x3e   : > { %667 = vmatpush.msra.mxu2 %v624_v32  ;;  %696 = vmatpush.msra.mxu3 %v640_v33 }
  0x40   : > { %668 = vmatpush.msra.mxu2 %v623_v36  ;;  %697 = vmatpush.msra.mxu3 %v639_v37 }
  0x42   : > { %669 = vmatpush.msra.mxu2 %v622_v42  ;;  %698 = vmatpush.msra.mxu3 %v638_v43 }
  0x74   : > { %v448_v44 = vpop.permute.xlu2 %447 }
  0x7c   : > { %v464_v60 = vpop.permute.xlu2 %463 }
  0x84   : > { %v466_v15 = vpop.permute.xlu2 %465 }
  0x8b   : > { %v462_v45 = vpop.permute.xlu1 %461 }
  0x8c   : > { %v430_v46 = vpop.permute.xlu0 %429  ;;  %v468_v35 = vpop.permute.xlu2 %467 }
  0x8d   : > { %v474_v53 = vsel %vm473_vm0, %v409_v47, %v430_v46  ;;  %v620_v46 = vld [vmem:[#allocation4] sm:$0xff] }
  0x8e   : > { %v636_v47 = vld [vmem:[#allocation4 + $0x80] sm:$0xff] }
  0x93   : > { %v432_v54 = vpop.permute.xlu1 %431 }
  0x94   : > { %v446_v55 = vpop.permute.xlu0 %445  ;;  %v475_v58 = vsel %vm473_vm0, %v410_v48, %v432_v54  ;;  %v532_v48 = vld [vmem:[%s1158_s5] sm:$0x3] }
  0x95   : > { %v479_v59 = vsel %vm478_vm1, %v474_v53, %v446_v55  ;;  %v480_v0 = vsel %vm478_vm1, %v475_v58, %v448_v44  ;;  %v621_v44 = vld [vmem:[#allocation4 + $0x8] sm:$0xff]  ;;  %v534_v49 = vperm.slane %v532_v48, 0  ;;  %v535_v50 = vperm.slane %v532_v48, 1 }
  0x96   : > { %v484_v61 = vsel %vm483_vm2, %v479_v59, %v462_v45  ;;  %v485_v5 = vsel %vm483_vm2, %v480_v0, %v464_v60  ;;  %v637_v45 = vld [vmem:[#allocation4 + $0x88] sm:$0xff]  ;;  %670 = vmatpush.msra.mxu2 %v621_v44 }
  0x97   : > { %vm488_vm3 = vcmp.gt.f32.partialorder %v484_v61, 0.0  ;;  %v492_v1 = vmul.f32 0.01, %v484_v61  ;;  %v493_v13 = vmul.f32 0.01, %v485_v5  ;;  %vm489_vm4 = vcmp.gt.f32.partialorder %v485_v5, 0.0  ;;  %699 = vmatpush.msra.mxu3 %v637_v45 }
  0x98   : > { %671 = vmatpush.msra.mxu2 %v620_v46 }
  0x99   : > { %v496_v4 = vsel %vm488_vm3, %v484_v61, %v492_v1  ;;  %v497_v21 = vsel %vm489_vm4, %v485_v5, %v493_v13  ;;  %700 = vmatpush.msra.mxu3 %v636_v47 }
  0x9a   : > { %554 = vmatmul.f32.vlgmr.msra.gmra.mxu0 %v496_v4  ;;  %583 = vmatmul.f32.vlgmr.msra.gmra.mxu1 %v496_v4 }
  0x9b   : > { %v450_v10 = vpop.permute.xlu1 %449 }
  0x9c   : > { %v434_v9 = vpop.permute.xlu0 %433 }
  0x9d   : > { %v476_v14 = vsel %vm473_vm0, %v411_v6, %v434_v9 }
  0x9e   : > { %v481_v18 = vsel %vm478_vm1, %v476_v14, %v450_v10 }
  0x9f   : > { %v486_v22 = vsel %vm483_vm2, %v481_v18, %v466_v15 }
  0xa0   : > { %v494_v30 = vmul.f32 0.01, %v486_v22  ;;  %vm490_vm5 = vcmp.gt.f32.partialorder %v486_v22, 0.0 }
  0xa2   : > { %557 = vmatmul.f32.gmra.mxu0 %v497_v21  ;;  %586 = vmatmul.f32.gmra.mxu1 %v497_v21  ;;  %v498_v38 = vsel %vm490_vm5, %v486_v22, %v494_v30  ;;  %v904_v21 = vld [vmem:[%s1160_s7] ss:$0 sm:$0xff] }
  0xa3   : > { %v452_v27 = vpop.permute.xlu1 %451 }
  0xa4   : > { %v436_v26 = vpop.permute.xlu0 %435 }
  0xa5   : > { %v477_v31 = vsel %vm473_vm0, %v412_v23, %v436_v26 }
  0xa6   : > { %v482_v34 = vsel %vm478_vm1, %v477_v31, %v452_v27 }
  0xa7   : > { %v487_v39 = vsel %vm483_vm2, %v482_v34, %v468_v35 }
  0xa8   : > { %v495_v40 = vmul.f32 0.01, %v487_v39  ;;  %vm491_vm6 = vcmp.gt.f32.partialorder %v487_v39, 0.0 }
  0xaa   : > { %560 = vmatmul.f32.gmra.mxu0 %v498_v38  ;;  %589 = vmatmul.f32.gmra.mxu1 %v498_v38  ;;  %v499_v41 = vsel %vm491_vm6, %v487_v39, %v495_v40 }
  0xb2   : > { %563 = vmatmul.f32.gmra.mxu0 %v499_v41  ;;  %592 = vmatmul.f32.gmra.mxu1 %v499_v41 }
 0x117   : > { %v555_v51 = vpop.f32.mrf.mxu0  ;;  %v584_v52 = vpop.f32.mrf.mxu1 }
 0x118   : > { %v556_v53 = vadd.f32 %v555_v51, %v534_v49  ;;  %v585_v54 = vadd.f32 %v584_v52, %v535_v50 }
 0x11a   : > { %vm596_vm7 = vcmp.gt.f32.partialorder %v556_v53, 0.0  ;;  %v604_v55 = vmul.f32 0.01, %v556_v53  ;;  %vm597_vm8 = vcmp.gt.f32.partialorder %v585_v54, 0.0  ;;  %v605_v56 = vmul.f32 0.01, %v585_v54 }
 0x11c   : > { %v612_v57 = vsel %vm596_vm7, %v556_v53, %v604_v55  ;;  %v613_v58 = vsel %vm597_vm8, %v585_v54, %v605_v56 }
 0x11d   : > { %672 = vmatmul.f32.vlgmr.msra.gmra.mxu2 %v612_v57  ;;  %701 = vmatmul.f32.vlgmr.msra.gmra.mxu3 %v613_v58 }
 0x11f   : > { %v558_v59 = vpop.f32.mrf.mxu0  ;;  %v587_v60 = vpop.f32.mrf.mxu1 }
 0x120   : > { %v559_v61 = vadd.f32 %v558_v59, %v534_v49  ;;  %v588_v62 = vadd.f32 %v587_v60, %v535_v50 }
 0x122   : > { %vm598_vm9 = vcmp.gt.f32.partialorder %v559_v61, 0.0  ;;  %v606_v63 = vmul.f32 0.01, %v559_v61  ;;  %vm599_vm10 = vcmp.gt.f32.partialorder %v588_v62, 0.0  ;;  %v607_v0 = vmul.f32 0.01, %v588_v62 }
 0x124   : > { %v614_v1 = vsel %vm598_vm9, %v559_v61, %v606_v63  ;;  %v615_v2 = vsel %vm599_vm10, %v588_v62, %v607_v0 }
 0x125   : > { %675 = vmatmul.f32.gmra.mxu2 %v614_v1  ;;  %704 = vmatmul.f32.gmra.mxu3 %v615_v2 }
 0x127   : > { %v561_v3 = vpop.f32.mrf.mxu0  ;;  %v590_v4 = vpop.f32.mrf.mxu1 }
 0x128   : > { %v562_v5 = vadd.f32 %v561_v3, %v534_v49  ;;  %v591_v6 = vadd.f32 %v590_v4, %v535_v50 }
 0x12a   : > { %vm600_vm11 = vcmp.gt.f32.partialorder %v562_v5, 0.0  ;;  %v608_v7 = vmul.f32 0.01, %v562_v5  ;;  %vm601_vm12 = vcmp.gt.f32.partialorder %v591_v6, 0.0  ;;  %v609_v8 = vmul.f32 0.01, %v591_v6 }
 0x12c   : > { %v616_v9 = vsel %vm600_vm11, %v562_v5, %v608_v7  ;;  %v617_v10 = vsel %vm601_vm12, %v591_v6, %v609_v8 }
 0x12d   : > { %678 = vmatmul.f32.gmra.mxu2 %v616_v9  ;;  %707 = vmatmul.f32.gmra.mxu3 %v617_v10 }
 0x12f   : > { %v564_v11 = vpop.f32.mrf.mxu0  ;;  %v593_v12 = vpop.f32.mrf.mxu1 }
 0x130   : > { %v565_v13 = vadd.f32 %v564_v11, %v534_v49  ;;  %v594_v14 = vadd.f32 %v593_v12, %v535_v50 }
 0x132   : > { %vm602_vm13 = vcmp.gt.f32.partialorder %v565_v13, 0.0  ;;  %v610_v15 = vmul.f32 0.01, %v565_v13  ;;  %vm603_vm14 = vcmp.gt.f32.partialorder %v594_v14, 0.0  ;;  %v611_v16 = vmul.f32 0.01, %v594_v14 }
 0x134   : > { %v618_v17 = vsel %vm602_vm13, %v565_v13, %v610_v15  ;;  %v619_v18 = vsel %vm603_vm14, %v594_v14, %v611_v16 }
 0x135   : > { %681 = vmatmul.f32.gmra.mxu2 %v618_v17  ;;  %710 = vmatmul.f32.gmra.mxu3 %v619_v18 }
 0x1a0   : > { %v673_v19 = vpop.f32.mrf.mxu2  ;;  %v702_v20 = vpop.f32.mrf.mxu3 }
 0x1a1   : > { %v674_v22 = vadd.f32 %v904_v21, %v673_v19 }
 0x1a3   : > { %v703_v26 = vadd.f32 %v702_v20, %v674_v22 }
 0x1a8   : > { %v676_v23 = vpop.f32.mrf.mxu2  ;;  %v705_v24 = vpop.f32.mrf.mxu3 }
 0x1a9   : > { %v677_v25 = vadd.f32 %v904_v21, %v676_v23 }
 0x1ab   : > { %v706_v27 = vadd.f32 %v705_v24, %v677_v25 }
 0x1ad   : > { %v860_v28 = vpack.c.bf16 %v706_v27, %v703_v26 }
 0x1af   : > { %861 = vst [vmem:[%s407_s28] sm:$0xff] %v860_v28  }
 0x1b0   : > { %v679_v29 = vpop.f32.mrf.mxu2  ;;  %v708_v30 = vpop.f32.mrf.mxu3 }
 0x1b1   : > { %v680_v31 = vadd.f32 %v904_v21, %v679_v29 }
 0x1b3   : > { %v709_v35 = vadd.f32 %v708_v30, %v680_v31 }
 0x1b8   : > { %v682_v32 = vpop.f32.mrf.mxu2  ;;  %v711_v34 = vpop.f32.mrf.mxu3 }
 0x1b9   : > { %v683_v33 = vadd.f32 %v904_v21, %v682_v32 }
 0x1bb   : > { %v712_v36 = vadd.f32 %v711_v34, %v683_v33 }
 0x1bd   : > { %v865_v37 = vpack.c.bf16 %v712_v36, %v709_v35 }
 0x1bf   : > { %867 = vst [vmem:[%s407_s28 + $0x8] sm:$0xff] %v865_v37  }
 0x1c0 PF: > { %s20_s27 = sadd.s32 1, %s979_s27  }
 0x1c1   : > { %p17_p7 = scmp.ge.s32.totalorder %s20_s27, 4  }
 0x1c3   :  { %19 = sbr.rel (!%p17_p7) target bundleno = 2 (0x2), region = 100 }
 0x1c8   :  { %744 = vsyncpa [#allocation3], 1 }
 0x1c9   :  { %746 = vsyncpa [#allocation3 + $0x1], 1 }
 0x1ca   :  { %747 = vsyncpa [#allocation5], 1 }

</bundles_post_ra>
